<compile_context>
chip_gen: v6e
topology: v6e:2x2x1
jax: 0.10.0
libtpu: 0.0.40
codegen_flags: <defaults>
</compile_context>

<pallas_src>
import functools
import numpy as np

import jax
import jax.numpy as jnp
from jax.experimental import pallas as pl
from jax.experimental.pallas import tpu as pltpu


# ---------------------------------------------------------------------------
# helpers
# ---------------------------------------------------------------------------
def _ceil_to(x, m):
    return ((x + m - 1) // m) * m


def _pad2d(x, rows, cols, value=0.0):
    r, c = x.shape
    return jnp.pad(x, ((0, rows - r), (0, cols - c)), constant_values=value)


# ---------------------------------------------------------------------------
# Pallas kernels
# ---------------------------------------------------------------------------
def _fused_ce_kernel(tc_ref, cum_ref, logits_ref,
                     newcum_ref, rw_ref, loss_ref,
                     nll_sc, cnt_sc, *,
                     num_classes, alpha, tm, n_valid, c1):
    """Fused: class histogram + cum_samples update + reweight + weighted CE.

    Grid axis 0 tiles the N = B*Q rows of the flattened logits ("arbitrary" /
    reduction).  Per-class accumulators (negative-log-prob sums, counts) live in
    VMEM scratch; the reweight vector and the final weighted-mean CE are computed
    once in the last step.
    """
    i = pl.program_id(0)

    @pl.when(i == 0)
    def _init():
        nll_sc[...] = jnp.zeros_like(nll_sc)
        cnt_sc[...] = jnp.zeros_like(cnt_sc)

    x = logits_ref[...]                                           # (tm, cp)
    tc = tc_ref[...]                                              # (tm, 1) int32
    col = jax.lax.broadcasted_iota(jnp.int32, x.shape, 1)         # lane index
    row = jax.lax.broadcasted_iota(jnp.int32, (tm, 1), 0) + i * tm
    rvalid = (row < n_valid).astype(jnp.float32)                  # (tm, 1)

    # mask padded class lanes; build one-hot on the fly (no dense one-hot input)
    x = jnp.where(col < c1, x, -1e30)
    onehot = (col == tc).astype(jnp.float32)                      # (tm, cp)

    m = jnp.max(x, axis=-1, keepdims=True)
    lse = m + jnp.log(jnp.sum(jnp.exp(x - m), axis=-1, keepdims=True))
    nll = lse - jnp.sum(onehot * x, axis=-1, keepdims=True)       # (tm, 1) = -log p_t

    nll_sc[...] += jnp.sum(onehot * (rvalid * nll), axis=0, keepdims=True)
    cnt_sc[...] += jnp.sum(onehot * rvalid, axis=0, keepdims=True)

    @pl.when(i == pl.num_programs(0) - 1)
    def _finalize():
        cum = cum_ref[...]                                        # (1, cp)
        lane = jax.lax.broadcasted_iota(jnp.int32, cum.shape, 1)
        fg = lane < num_classes                                   # skip no-object class
        new_cum = cum + jnp.where(fg, cnt_sc[...], 0.0)
        total = jnp.sum(jnp.where(fg, new_cum, 0.0), axis=-1, keepdims=True)
        freq = new_cum * pl.reciprocal(total, approx=True)
        rw = alpha * (1.0 - freq) ** 2
        # reference hard-codes reweight[80] = 1.0; with num_classes == 80 this is the
        # no-object class -> use num_classes so it stays on the right lane generically.
        rw = jnp.where(lane == num_classes, 1.0, rw)

        # weighted-mean cross entropy: sum_c w[c]*nll_sum[c] / sum_c w[c]*count[c]
        num = jnp.sum(rw * nll_sc[...], axis=-1, keepdims=True)   # (1, 1)
        den = jnp.sum(rw * cnt_sc[...], axis=-1, keepdims=True)
        loss = num * pl.reciprocal(den, approx=True)

        newcum_ref[...] = new_cum
        rw_ref[...] = rw
        out_lane = jax.lax.broadcasted_iota(jnp.int32, (1, 128), 1)
        loss_ref[...] = jnp.where(out_lane == 0, loss, 0.0)       # lane-dense scalar slab


def _mask_losses_kernel(lg_ref, lb_ref, out_ref,
                        bce_sc, pt_sc, p_sc, t_sc, *,
                        m_valid, p_valid, tp, inv_points, inv_masks):
    """sigmoid_ce_loss + dice_loss over sampled points, tiled along points axis."""
    j = pl.program_id(0)

    @pl.when(j == 0)
    def _init():
        bce_sc[...] = jnp.zeros_like(bce_sc)
        pt_sc[...] = jnp.zeros_like(pt_sc)
        p_sc[...] = jnp.zeros_like(p_sc)
        t_sc[...] = jnp.zeros_like(t_sc)

    x = lg_ref[...]                                               # (mp, tp)
    t = lb_ref[...]
    row = jax.lax.broadcasted_iota(jnp.int32, (x.shape[0], 1), 0)
    col = jax.lax.broadcasted_iota(jnp.int32, x.shape, 1) + j * tp
    valid = ((row < m_valid) & (col < p_valid)).astype(jnp.float32)

    # BCE-with-logits + sigmoid sharing a single exp (EUP-lean).
    e = jnp.exp(-jnp.abs(x))
    bce = (jnp.maximum(x, 0.0) - x * t + jnp.log(1.0 + e)) * valid
    inv1pe = pl.reciprocal(1.0 + e, approx=True)
    sig = jnp.where(x >= 0.0, inv1pe, e * inv1pe)
    p_ = sig * valid
    tt = t * valid

    bce_sc[...] += jnp.sum(bce, axis=-1, keepdims=True)
    pt_sc[...] += jnp.sum(p_ * tt, axis=-1, keepdims=True)
    p_sc[...] += jnp.sum(p_, axis=-1, keepdims=True)
    t_sc[...] += jnp.sum(tt, axis=-1, keepdims=True)

    @pl.when(j == pl.num_programs(0) - 1)
    def _finalize():
        rvalid = (row < m_valid).astype(jnp.float32)              # (mp, 1)
        ce = jnp.sum(bce_sc[...] * inv_points, axis=0, keepdims=True) * inv_masks
        numer = 2.0 * pt_sc[...] + 1.0
        denom = p_sc[...] + t_sc[...] + 1.0
        dice_rows = (1.0 - numer * pl.reciprocal(denom, approx=True)) * rvalid
        dice = jnp.sum(dice_rows, axis=0, keepdims=True) * inv_masks
        lane = jax.lax.broadcasted_iota(jnp.int32, (1, 128), 1)
        out_ref[...] = (jnp.where(lane == 0, ce, 0.0)
                        + jnp.where(lane == 1, dice, 0.0))        # lane 0: ce, lane 1: dice


# ---------------------------------------------------------------------------
# Pallas wrappers
# ---------------------------------------------------------------------------
def fused_reweight_and_ce(logits2d, target_classes_flat, cum_samples, num_classes, alpha):
    """Single pallas_call: histogram/cum update + reweight + weighted CE."""
    n, c1 = logits2d.shape
    cp = _ceil_to(max(c1, 128), 128)
    tm = 256 if n >= 256 else _ceil_to(max(n, 8), 8)
    np_ = _ceil_to(max(n, tm), tm)

    logits_p = _pad2d(logits2d.astype(jnp.float32), np_, cp)      # pad value irrelevant (masked in-kernel)
    tc_p = jnp.full((np_, 1), num_classes, jnp.int32)
    tc_p = tc_p.at[:n, 0].set(target_classes_flat.astype(jnp.int32))
    cum_p = _pad2d(cum_samples.astype(jnp.float32)[None, :], 1, cp)

    grid = (np_ // tm,)
    new_cum_p, rw_p, loss_slab = pl.pallas_call(
        functools.partial(_fused_ce_kernel, num_classes=num_classes,
                          alpha=float(alpha), tm=tm, n_valid=n, c1=c1),
        grid=grid,
        in_specs=[pl.BlockSpec((tm, 1), lambda i: (i, 0)),        # target classes (int32)
                  pl.BlockSpec((1, cp), lambda i: (0, 0)),        # cum_samples buffer
                  pl.BlockSpec((tm, cp), lambda i: (i, 0))],      # logits tile
        out_specs=(pl.BlockSpec((1, cp), lambda i: (0, 0)),
                   pl.BlockSpec((1, cp), lambda i: (0, 0)),
                   pl.BlockSpec((1, 128), lambda i: (0, 0))),
        out_shape=(jax.ShapeDtypeStruct((1, cp), jnp.float32),
                   jax.ShapeDtypeStruct((1, cp), jnp.float32),
                   jax.ShapeDtypeStruct((1, 128), jnp.float32)),
        scratch_shapes=[pltpu.VMEM((1, cp), jnp.float32),         # per-class nll sums
                        pltpu.VMEM((1, cp), jnp.float32)],        # per-class counts
        compiler_params=pltpu.CompilerParams(dimension_semantics=("arbitrary",)),
    )(tc_p, cum_p, logits_p)
    return new_cum_p[0, :c1], rw_p[0, :c1], loss_slab[0, 0]


def point_mask_losses(point_logits, point_labels, num_masks):
    """sigmoid-CE + dice over sampled points (points axis tiled)."""
    m, p = point_logits.shape
    mp = _ceil_to(max(m, 8), 8)
    tp = 2048 if p >= 2048 else _ceil_to(max(p, 128), 128)
    pp = _ceil_to(max(p, tp), tp)

    lg = _pad2d(point_logits.astype(jnp.float32), mp, pp)
    lb = _pad2d(point_labels.astype(jnp.float32), mp, pp)

    grid = (pp // tp,)
    out = pl.pallas_call(
        functools.partial(_mask_losses_kernel, m_valid=m, p_valid=p, tp=tp,
                          inv_points=1.0 / float(p), inv_masks=1.0 / float(num_masks)),
        grid=grid,
        in_specs=[pl.BlockSpec((mp, tp), lambda j: (0, j)),
                  pl.BlockSpec((mp, tp), lambda j: (0, j))],
        out_specs=pl.BlockSpec((1, 128), lambda j: (0, 0)),
        out_shape=jax.ShapeDtypeStruct((1, 128), jnp.float32),
        scratch_shapes=[pltpu.VMEM((mp, 1), jnp.float32),         # bce row sums
                        pltpu.VMEM((mp, 1), jnp.float32),         # sum(p*t)
                        pltpu.VMEM((mp, 1), jnp.float32),         # sum(p)
                        pltpu.VMEM((mp, 1), jnp.float32)],        # sum(t)
        compiler_params=pltpu.CompilerParams(dimension_semantics=("arbitrary",)),
    )(lg, lb)
    return out[0, 0], out[0, 1]


# ---------------------------------------------------------------------------
# JAX glue: point_sample (bilinear grid_sample, align_corners=False, zero pad)
# and uncertain point sampling (no-grad / random — plain JAX).
# ---------------------------------------------------------------------------
def point_sample(img, coords):
    """img: (M, H, W); coords: (M, P, 2) in [0,1] (x, y). Returns (M, P)."""
    mm, h, w = img.shape
    x = 2.0 * coords[..., 0] - 1.0
    y = 2.0 * coords[..., 1] - 1.0
    ix = ((x + 1.0) * w - 1.0) / 2.0
    iy = ((y + 1.0) * h - 1.0) / 2.0
    x0 = jnp.floor(ix); y0 = jnp.floor(iy)
    x1 = x0 + 1.0; y1 = y0 + 1.0
    wx1 = ix - x0; wx0 = 1.0 - wx1
    wy1 = iy - y0; wy0 = 1.0 - wy1
    flat = img.reshape(mm, h * w)

    def gather(yy, xx):
        valid = (xx >= 0) & (xx <= w - 1) & (yy >= 0) & (yy <= h - 1)
        xi = jnp.clip(xx, 0, w - 1).astype(jnp.int32)
        yi = jnp.clip(yy, 0, h - 1).astype(jnp.int32)
        vals = jnp.take_along_axis(flat, yi * w + xi, axis=1)
        return jnp.where(valid, vals, 0.0)

    return (gather(y0, x0) * wy0 * wx0 + gather(y0, x1) * wy0 * wx1 +
            gather(y1, x0) * wy1 * wx0 + gather(y1, x1) * wy1 * wx1)


def get_uncertain_point_coords_with_randomness(key, coarse_logits, num_points,
                                               oversample_ratio, importance_sample_ratio):
    mm = coarse_logits.shape[0]
    num_sampled = int(num_points * oversample_ratio)
    k1, k2 = jax.random.split(key)
    point_coords = jax.random.uniform(k1, (mm, num_sampled, 2), dtype=jnp.float32)
    point_logits = point_sample(coarse_logits, point_coords)
    point_uncertainties = -jnp.abs(point_logits)           # calculate_uncertainty
    num_uncertain = int(importance_sample_ratio * num_points)
    num_random = num_points - num_uncertain
    _, idx = jax.lax.top_k(point_uncertainties, num_uncertain)
    idx3 = jnp.broadcast_to(idx[..., None], (mm, num_uncertain, 2))
    sel = jnp.take_along_axis(point_coords, idx3, axis=1)
    if num_random > 0:
        rnd = jax.random.uniform(k2, (mm, num_random, 2), dtype=jnp.float32)
        sel = jnp.concatenate([sel, rnd], axis=1)
    return sel


# ---------------------------------------------------------------------------
# SetCriterion forward
# ---------------------------------------------------------------------------
class SetCriterionPallas:
    def __init__(self, num_classes, eos_coef, losses, num_points,
                 oversample_ratio, importance_sample_ratio, alpha_weight):
        self.num_classes = num_classes
        self.eos_coef = eos_coef
        self.losses = losses
        self.num_points = num_points
        self.oversample_ratio = oversample_ratio
        self.importance_sample_ratio = importance_sample_ratio
        self.alpha = alpha_weight
        # deterministic buffers (as in __init__)
        self.empty_weight = jnp.ones((num_classes + 1,), jnp.float32).at[-1].set(eos_coef)
        self.cum_samples = jnp.ones((num_classes + 1,), jnp.float32)

    def forward(self, outputs, targets, rng_key):
        indices = outputs['pred_matching_indices']
        # num_masks (world size 1, clamp >= 1)
        num_masks = float(max(sum(int(t['labels'].shape[0]) for t in targets), 1))

        pred_logits = outputs['pred_logits'].astype(jnp.float32)
        b, q, c1 = pred_logits.shape

        # build target_classes via the src-permutation (host-side glue; requires
        # concrete matching indices, as provided via `pred_matching_indices`)
        tc = np.full((b, q), self.num_classes, dtype=np.int32)
        for bi, (src, tgt) in enumerate(indices):
            labels_b = np.asarray(targets[bi]['labels'])
            tc[bi, np.asarray(src)] = labels_b[np.asarray(tgt)]
        target_classes = jnp.asarray(tc, jnp.int32)

        # fused: cum_samples histogram update + class reweight + weighted CE (one launch)
        new_cum, reweight, loss_ce = fused_reweight_and_ce(
            pred_logits.reshape(b * q, c1), target_classes.reshape(-1),
            self.cum_samples, self.num_classes, self.alpha)
        self.cum_samples = new_cum
        self.last_reweight = reweight   # kept for parity / would feed aux losses

        losses = {}
        if 'labels' in self.losses:
            losses['loss_ce'] = loss_ce

        if 'masks' in self.losses:
            src_masks = jnp.concatenate(
                [outputs['pred_masks'][bi][jnp.asarray(np.asarray(src))]
                 for bi, (src, _tgt) in enumerate(indices)], axis=0).astype(jnp.float32)
            tgt_masks = jnp.concatenate(
                [targets[bi]['masks'][jnp.asarray(np.asarray(tgt))]
                 for bi, (_src, tgt) in enumerate(indices)], axis=0).astype(jnp.float32)
            coords = get_uncertain_point_coords_with_randomness(
                rng_key, src_masks, self.num_points, self.oversample_ratio,
                self.importance_sample_ratio)
            point_labels = point_sample(tgt_masks, coords)
            point_logits = point_sample(src_masks, coords)
            lm, ld = point_mask_losses(point_logits, point_labels, num_masks)
            losses['loss_mask'] = lm
            losses['loss_dice'] = ld
        return losses


# ---------------------------------------------------------------------------
if __name__ == "__main__":
    key = jax.random.PRNGKey(0)
    B, Q, H, W = 2, 8, 16, 16
    NUM_CLASSES = 80  # reference forward hard-codes reweight[80] = 1.0 -> COCO-style class count
    k1, k2, k3, k4, kr = jax.random.split(key, 5)

    pred_logits = jax.random.normal(k1, (B, Q, NUM_CLASSES + 1), jnp.float32)
    pred_masks = jax.random.normal(k2, (B, Q, H, W), jnp.float32)

    targets = [
        {'labels': jnp.array([3, 17, 42], jnp.int32),
         'masks': (jax.random.uniform(k3, (3, H, W)) > 0.5).astype(jnp.float32)},
        {'labels': jnp.array([7, 55], jnp.int32),
         'masks': (jax.random.uniform(k4, (2, H, W)) > 0.5).astype(jnp.float32)},
    ]
    # deterministic matching (stands in for the Hungarian matcher output)
    indices = [(np.array([1, 4, 6]), np.array([0, 1, 2])),
               (np.array([0, 3]), np.array([1, 0]))]

    outputs = {'pred_logits': pred_logits,
               'pred_masks': pred_masks,
               'pred_matching_indices': indices}

    criterion = SetCriterionPallas(
        num_classes=NUM_CLASSES, eos_coef=0.1, losses=['labels', 'masks'],
        num_points=16, oversample_ratio=3.0, importance_sample_ratio=0.75,
        alpha_weight=3.0)

    losses = criterion.forward(outputs, targets, kr)
    jax.block_until_ready(losses)
    for name in ('loss_ce', 'loss_mask', 'loss_dice'):
        assert jnp.isfinite(losses[name]), name
    print("KERNEL_OK")
</pallas_src>

<mosaic_0001>
module attributes {stable_mosaic.version = 11 : i64} {
  func.func @_fused_ce_kernel(%arg0: i32, %arg1: memref<16x1xi32, #tpu.memory_space<vmem>>, %arg2: memref<1x128xf32, #tpu.memory_space<vmem>>, %arg3: memref<16x128xf32, #tpu.memory_space<vmem>>, %arg4: memref<1x128xf32, #tpu.memory_space<vmem>>, %arg5: memref<1x128xf32, #tpu.memory_space<vmem>>, %arg6: memref<1x128xf32, #tpu.memory_space<vmem>>, %arg7: memref<1x128xf32, #tpu.memory_space<vmem>>, %arg8: memref<1x128xf32, #tpu.memory_space<vmem>>) attributes {dimension_semantics = [#tpu.dimension_semantics<arbitrary>], iteration_bounds = array<i64: 1>, scalar_prefetch = 0 : i64, scratch_operands = 2 : i64, tpu.core_type = #tpu.core_type<tc>, window_params = [{transform_indices = @transform_0, window_bounds = array<i64: 16, 1>}, {pipeline_mode = #tpu.pipeline_mode<synchronous>, transform_indices = @transform_1, window_bounds = array<i64: 1, 128>}, {transform_indices = @transform_2, window_bounds = array<i64: 16, 128>}, {pipeline_mode = #tpu.pipeline_mode<synchronous>, transform_indices = @transform_3, window_bounds = array<i64: 1, 128>}, {pipeline_mode = #tpu.pipeline_mode<synchronous>, transform_indices = @transform_4, window_bounds = array<i64: 1, 128>}, {pipeline_mode = #tpu.pipeline_mode<synchronous>, transform_indices = @transform_5, window_bounds = array<i64: 1, 128>}]} {
    %c0_i32 = arith.constant 0 : i32
    %0 = arith.cmpi eq, %arg0, %c0_i32 : i32
    %1 = arith.extui %0 : i1 to i32
    %c0_i32_0 = arith.constant 0 : i32
    %2 = arith.cmpi ne, %1, %c0_i32_0 : i32
    scf.if %2 {
      %cst_20 = arith.constant 0.000000e+00 : f32
      %53 = vector.broadcast %cst_20 : f32 to vector<1x128xf32>
      %c0_21 = arith.constant 0 : index
      %c0_22 = arith.constant 0 : index
      %54 = vector.load %arg7[%c0_21, %c0_22] : memref<1x128xf32, #tpu.memory_space<vmem>>, vector<1x128xf32>
      tpu.vector_store %arg7[%c0_21, %c0_22], %53 {strides = array<i32>} : memref<1x128xf32, #tpu.memory_space<vmem>>, vector<1x128xf32>,
      %cst_23 = arith.constant 0.000000e+00 : f32
      %55 = vector.broadcast %cst_23 : f32 to vector<1x128xf32>
      %c0_24 = arith.constant 0 : index
      %c0_25 = arith.constant 0 : index
      %56 = vector.load %arg8[%c0_24, %c0_25] : memref<1x128xf32, #tpu.memory_space<vmem>>, vector<1x128xf32>
      tpu.vector_store %arg8[%c0_24, %c0_25], %55 {strides = array<i32>} : memref<1x128xf32, #tpu.memory_space<vmem>>, vector<1x128xf32>,
    } else {
    }
    %c0 = arith.constant 0 : index
    %c0_1 = arith.constant 0 : index
    %3 = vector.load %arg3[%c0, %c0_1] : memref<16x128xf32, #tpu.memory_space<vmem>>, vector<16x128xf32>
    %c0_2 = arith.constant 0 : index
    %c0_3 = arith.constant 0 : index
    %4 = vector.load %arg1[%c0_2, %c0_3] : memref<16x1xi32, #tpu.memory_space<vmem>>, vector<16x1xi32>
    %5 = tpu.iota {dimensions = array<i32: 1>} : vector<16x128xi32>
    %6 = tpu.iota {dimensions = array<i32: 0>} : vector<16x1xi32>
    %c16_i32 = arith.constant 16 : i32
    %7 = arith.muli %arg0, %c16_i32 : i32
    %8 = vector.broadcast %7 : i32 to vector<16x1xi32>
    %9 = arith.addi %6, %8 : vector<16x1xi32>
    %c16_i32_4 = arith.constant 16 : i32
    %10 = vector.broadcast %c16_i32_4 : i32 to vector<16x1xi32>
    %11 = arith.cmpi slt, %9, %10 : vector<16x1xi32>
    %12 = arith.extui %11 : vector<16x1xi1> to vector<16x1xi32>
    %13 = arith.sitofp %12 : vector<16x1xi32> to vector<16x1xf32>
    %c81_i32 = arith.constant 81 : i32
    %14 = vector.broadcast %c81_i32 : i32 to vector<16x128xi32>
    %15 = arith.cmpi slt, %5, %14 : vector<16x128xi32>
    %cst = arith.constant -1.000000e+30 : f32
    %16 = vector.broadcast %cst : f32 to vector<16x128xf32>
    %17 = arith.select %15, %3, %16 : vector<16x128xi1>, vector<16x128xf32>
    %18 = vector.broadcast %4 : vector<16x1xi32> to vector<16x128xi32>
    %19 = arith.cmpi eq, %5, %18 : vector<16x128xi32>
    %20 = arith.extui %19 : vector<16x128xi1> to vector<16x128xi32>
    %21 = arith.sitofp %20 : vector<16x128xi32> to vector<16x128xf32>
    %cst_5 = arith.constant dense<0xFF800000> : vector<16xf32>
    %22 = vector.multi_reduction <maximumf>, %17, %cst_5 [1] : vector<16x128xf32> to vector<16xf32>
    %23 = vector.shape_cast %22 : vector<16xf32> to vector<16x1xf32>
    %24 = vector.broadcast %23 : vector<16x1xf32> to vector<16x128xf32>
    %25 = arith.subf %17, %24 : vector<16x128xf32>
    %26 = math.exp %25 : vector<16x128xf32>
    %cst_6 = arith.constant dense<0.000000e+00> : vector<16xf32>
    %27 = vector.multi_reduction <add>, %26, %cst_6 [1] : vector<16x128xf32> to vector<16xf32>
    %28 = vector.shape_cast %27 : vector<16xf32> to vector<16x1xf32>
    %29 = math.log %28 : vector<16x1xf32>
    %30 = arith.addf %23, %29 : vector<16x1xf32>
    %31 = arith.mulf %21, %17 : vector<16x128xf32>
    %cst_7 = arith.constant dense<0.000000e+00> : vector<16xf32>
    %32 = vector.multi_reduction <add>, %31, %cst_7 [1] : vector<16x128xf32> to vector<16xf32>
    %33 = vector.shape_cast %32 : vector<16xf32> to vector<16x1xf32>
    %34 = arith.subf %30, %33 : vector<16x1xf32>
    %c0_8 = arith.constant 0 : index
    %c0_9 = arith.constant 0 : index
    %35 = vector.load %arg7[%c0_8, %c0_9] : memref<1x128xf32, #tpu.memory_space<vmem>>, vector<1x128xf32>
    %36 = arith.mulf %13, %34 : vector<16x1xf32>
    %37 = vector.broadcast %36 : vector<16x1xf32> to vector<16x128xf32>
    %38 = arith.mulf %21, %37 : vector<16x128xf32>
    %cst_10 = arith.constant dense<0.000000e+00> : vector<128xf32>
    %39 = vector.multi_reduction <add>, %38, %cst_10 [0] : vector<16x128xf32> to vector<128xf32>
    %40 = vector.shape_cast %39 : vector<128xf32> to vector<1x128xf32>
    %41 = arith.addf %35, %40 : vector<1x128xf32>
    %c0_11 = arith.constant 0 : index
    %c0_12 = arith.constant 0 : index
    %42 = vector.load %arg7[%c0_11, %c0_12] : memref<1x128xf32, #tpu.memory_space<vmem>>, vector<1x128xf32>
    tpu.vector_store %arg7[%c0_11, %c0_12], %41 {strides = array<i32>} : memref<1x128xf32, #tpu.memory_space<vmem>>, vector<1x128xf32>,
    %c0_13 = arith.constant 0 : index
    %c0_14 = arith.constant 0 : index
    %43 = vector.load %arg8[%c0_13, %c0_14] : memref<1x128xf32, #tpu.memory_space<vmem>>, vector<1x128xf32>
    %44 = vector.broadcast %13 : vector<16x1xf32> to vector<16x128xf32>
    %45 = arith.mulf %21, %44 : vector<16x128xf32>
    %cst_15 = arith.constant dense<0.000000e+00> : vector<128xf32>
    %46 = vector.multi_reduction <add>, %45, %cst_15 [0] : vector<16x128xf32> to vector<128xf32>
    %47 = vector.shape_cast %46 : vector<128xf32> to vector<1x128xf32>
    %48 = arith.addf %43, %47 : vector<1x128xf32>
    %c0_16 = arith.constant 0 : index
    %c0_17 = arith.constant 0 : index
    %49 = vector.load %arg8[%c0_16, %c0_17] : memref<1x128xf32, #tpu.memory_space<vmem>>, vector<1x128xf32>
    tpu.vector_store %arg8[%c0_16, %c0_17], %48 {strides = array<i32>} : memref<1x128xf32, #tpu.memory_space<vmem>>, vector<1x128xf32>,
    %c0_i32_18 = arith.constant 0 : i32
    %50 = arith.cmpi eq, %arg0, %c0_i32_18 : i32
    %51 = arith.extui %50 : i1 to i32
    %c0_i32_19 = arith.constant 0 : i32
    %52 = arith.cmpi ne, %51, %c0_i32_19 : i32
    scf.if %52 {
      %c0_20 = arith.constant 0 : index
      %c0_21 = arith.constant 0 : index
      %53 = vector.load %arg2[%c0_20, %c0_21] : memref<1x128xf32, #tpu.memory_space<vmem>>, vector<1x128xf32>
      %54 = tpu.iota {dimensions = array<i32: 1>} : vector<1x128xi32>
      %c80_i32 = arith.constant 80 : i32
      %55 = vector.broadcast %c80_i32 : i32 to vector<1x128xi32>
      %56 = arith.cmpi slt, %54, %55 : vector<1x128xi32>
      %c0_22 = arith.constant 0 : index
      %c0_23 = arith.constant 0 : index
      %57 = vector.load %arg8[%c0_22, %c0_23] : memref<1x128xf32, #tpu.memory_space<vmem>>, vector<1x128xf32>
      %cst_24 = arith.constant 0.000000e+00 : f32
      %58 = vector.broadcast %cst_24 : f32 to vector<1x128xf32>
      %59 = arith.select %56, %57, %58 : vector<1x128xi1>, vector<1x128xf32>
      %60 = arith.addf %53, %59 : vector<1x128xf32>
      %cst_25 = arith.constant 0.000000e+00 : f32
      %61 = vector.broadcast %cst_25 : f32 to vector<1x128xf32>
      %62 = arith.select %56, %60, %61 : vector<1x128xi1>, vector<1x128xf32>
      %cst_26 = arith.constant dense<0.000000e+00> : vector<1xf32>
      %63 = vector.multi_reduction <add>, %62, %cst_26 [1] : vector<1x128xf32> to vector<1xf32>
      %64 = vector.shape_cast %63 : vector<1xf32> to vector<1x1xf32>
      %65 = tpu.reciprocal %64 {approx = true} : vector<1x1xf32> -> vector<1x1xf32>
      %66 = vector.broadcast %65 : vector<1x1xf32> to vector<1x128xf32>
      %67 = arith.mulf %60, %66 : vector<1x128xf32>
      %cst_27 = arith.constant 1.000000e+00 : f32
      %68 = vector.broadcast %cst_27 : f32 to vector<1x128xf32>
      %69 = arith.subf %68, %67 : vector<1x128xf32>
      %70 = arith.mulf %69, %69 : vector<1x128xf32>
      %cst_28 = arith.constant 3.000000e+00 : f32
      %71 = vector.broadcast %cst_28 : f32 to vector<1x128xf32>
      %72 = arith.mulf %71, %70 : vector<1x128xf32>
      %c80_i32_29 = arith.constant 80 : i32
      %73 = vector.broadcast %c80_i32_29 : i32 to vector<1x128xi32>
      %74 = arith.cmpi eq, %54, %73 : vector<1x128xi32>
      %cst_30 = arith.constant 1.000000e+00 : f32
      %75 = vector.broadcast %cst_30 : f32 to vector<1x128xf32>
      %76 = arith.select %74, %75, %72 : vector<1x128xi1>, vector<1x128xf32>
      %c0_31 = arith.constant 0 : index
      %c0_32 = arith.constant 0 : index
      %77 = vector.load %arg7[%c0_31, %c0_32] : memref<1x128xf32, #tpu.memory_space<vmem>>, vector<1x128xf32>
      %78 = arith.mulf %76, %77 : vector<1x128xf32>
      %cst_33 = arith.constant dense<0.000000e+00> : vector<1xf32>
      %79 = vector.multi_reduction <add>, %78, %cst_33 [1] : vector<1x128xf32> to vector<1xf32>
      %80 = vector.shape_cast %79 : vector<1xf32> to vector<1x1xf32>
      %c0_34 = arith.constant 0 : index
      %c0_35 = arith.constant 0 : index
      %81 = vector.load %arg8[%c0_34, %c0_35] : memref<1x128xf32, #tpu.memory_space<vmem>>, vector<1x128xf32>
      %82 = arith.mulf %76, %81 : vector<1x128xf32>
      %cst_36 = arith.constant dense<0.000000e+00> : vector<1xf32>
      %83 = vector.multi_reduction <add>, %82, %cst_36 [1] : vector<1x128xf32> to vector<1xf32>
      %84 = vector.shape_cast %83 : vector<1xf32> to vector<1x1xf32>
      %85 = tpu.reciprocal %84 {approx = true} : vector<1x1xf32> -> vector<1x1xf32>
      %86 = arith.mulf %80, %85 : vector<1x1xf32>
      %c0_37 = arith.constant 0 : index
      %c0_38 = arith.constant 0 : index
      %87 = vector.load %arg4[%c0_37, %c0_38] : memref<1x128xf32, #tpu.memory_space<vmem>>, vector<1x128xf32>
      tpu.vector_store %arg4[%c0_37, %c0_38], %60 {strides = array<i32>} : memref<1x128xf32, #tpu.memory_space<vmem>>, vector<1x128xf32>,
      %c0_39 = arith.constant 0 : index
      %c0_40 = arith.constant 0 : index
      %88 = vector.load %arg5[%c0_39, %c0_40] : memref<1x128xf32, #tpu.memory_space<vmem>>, vector<1x128xf32>
      tpu.vector_store %arg5[%c0_39, %c0_40], %76 {strides = array<i32>} : memref<1x128xf32, #tpu.memory_space<vmem>>, vector<1x128xf32>,
      %89 = tpu.iota {dimensions = array<i32: 1>} : vector<1x128xi32>
      %c0_i32_41 = arith.constant 0 : i32
      %90 = vector.broadcast %c0_i32_41 : i32 to vector<1x128xi32>
      %91 = arith.cmpi eq, %89, %90 : vector<1x128xi32>
      %cst_42 = arith.constant 0.000000e+00 : f32
      %92 = vector.shape_cast %86 : vector<1x1xf32> to vector<1x1xf32>
      %93 = vector.broadcast %92 : vector<1x1xf32> to vector<1x128xf32>
      %94 = vector.broadcast %cst_42 : f32 to vector<1x128xf32>
      %95 = arith.select %91, %93, %94 : vector<1x128xi1>, vector<1x128xf32>
      %c0_43 = arith.constant 0 : index
      %c0_44 = arith.constant 0 : index
      %96 = vector.load %arg6[%c0_43, %c0_44] : memref<1x128xf32, #tpu.memory_space<vmem>>, vector<1x128xf32>
      tpu.vector_store %arg6[%c0_43, %c0_44], %95 {strides = array<i32>} : memref<1x128xf32, #tpu.memory_space<vmem>>, vector<1x128xf32>,
    } else {
    }
    return
  }
  func.func @transform_0(%arg0: i32) -> (i32, i32) {
    %c0_i32 = arith.constant 0 : i32
    %c0_i32_0 = arith.constant 0 : i32
    return %arg0, %c0_i32 : i32, i32
  }
  func.func @transform_1(%arg0: i32) -> (i32, i32) {
    %c0_i32 = arith.constant 0 : i32
    %c0_i32_0 = arith.constant 0 : i32
    %c0_i32_1 = arith.constant 0 : i32
    return %c0_i32, %c0_i32_0 : i32, i32
  }
  func.func @transform_2(%arg0: i32) -> (i32, i32) {
    %c0_i32 = arith.constant 0 : i32
    %c0_i32_0 = arith.constant 0 : i32
    return %arg0, %c0_i32 : i32, i32
  }
  func.func @transform_3(%arg0: i32) -> (i32, i32) {
    %c0_i32 = arith.constant 0 : i32
    %c0_i32_0 = arith.constant 0 : i32
    %c0_i32_1 = arith.constant 0 : i32
    return %c0_i32, %c0_i32_0 : i32, i32
  }
  func.func @transform_4(%arg0: i32) -> (i32, i32) {
    %c0_i32 = arith.constant 0 : i32
    %c0_i32_0 = arith.constant 0 : i32
    %c0_i32_1 = arith.constant 0 : i32
    return %c0_i32, %c0_i32_0 : i32, i32
  }
  func.func @transform_5(%arg0: i32) -> (i32, i32) {
    %c0_i32 = arith.constant 0 : i32
    %c0_i32_0 = arith.constant 0 : i32
    %c0_i32_1 = arith.constant 0 : i32
    return %c0_i32, %c0_i32_0 : i32, i32
  }
}

</mosaic_0001>

<bundles_post_ra>
// kernel: tpu_custom_call.1
= control target key start
LH: loop header
LB: loop body
LE: loop exit
PB: predicated region body
PF: predicated region fallthrough
CT: control target
= control target key end

     0   :  { %11 = vsyncpa [#allocation5], 0  ;;  %v29_v1 = vlaneseq  ;;  %v275_v2 = vmov 0   ;;  %v276_v3 = vmov 0.0   ;;  %s345_s0 = inlined_call_operand.vmem [shape: s32[16,1], index: 0, kind: input, shape index: {}]   ;;  %s346_s1 = inlined_call_operand.vmem [shape: f32[1,128], index: 1, kind: input, shape index: {}]   ;;  %s347_s2 = inlined_call_operand.vmem [shape: f32[16,128], index: 2, kind: input, shape index: {}]   ;;  %s348_s3 = inlined_call_operand.hbm [shape: f32[1,128], index: 3, kind: output, shape index: {0}]   ;;  %s349_s4 = inlined_call_operand.hbm [shape: f32[1,128], index: 4, kind: output, shape index: {1}]   ;;  %s350_s5 = inlined_call_operand.hbm [shape: f32[1,128], index: 5, kind: output, shape index: {2}]  }
   0x1   :  { %v27_v0 = vld [vmem:[%s345_s0] sm:$0xff]  ;;  %197 = vset.pattern.permute.xlu1 %v275_v2  ;;  %23 = vst [vmem:[#allocation2] sm:$0x1] %v276_v3  ;;  %24 = vst [vmem:[#allocation3] sm:$0x1] %v276_v3 }
   0x2   :  { %12 = vsyncpa [#allocation7], 0  ;;  %198 = vset.pattern.permute.xlu0 %v275_v2  ;;  %48 = vperm.xlu1 %197, %v27_v0   ;;  %v25_v4 = vld [vmem:[%s347_s2] sm:$0xff]  ;;  %v316_v5 = vand.u32 127, %v29_v1  ;;  %v28_v6 = vld [vmem:[%s345_s0 + $0x8] sm:$0xff]  ;;  %vm122_vm4 = vcmask 1040384  }
   0x3   :  { %v26_v7 = vld [vmem:[%s347_s2 + $0x8] sm:$0xff]  ;;  %v116_v29 = vld [vmem:[%s346_s1] sm:$0x1]  ;;  %s277_s1 = smov [#allocation6]   ;;  %s278_s27 = smov [#allocation4]  }
   0x4   :  { %vm44_vm0 = vcmp.lt.s32.totalorder %v316_v5, 81  ;;  %vm117_vm3 = vcmp.lt.s32.totalorder %v316_v5, 80  ;;  %vm131_vm5 = vcmp.eq.s32.totalorder %v316_v5, 80  ;;  %s165_s26 = sshll.u32 %s277_s1, 4  ;;  %s155_s28 = sshll.u32 %s278_s27, 4  ;;  %s166_s26 = int_to_ptr.vmem [resolvable:$true] %s165_s26  ;;  %s156_s28 = int_to_ptr.vmem [resolvable:$true] %s155_s28 }
   0x5   :  { %v45_v8 = vsel %vm44_vm0, %v25_v4, -1e+30  ;;  %v46_v9 = vsel %vm44_vm0, %v26_v7, -1e+30  ;;  %s211_s29 = scalar_lea.vmem %s166_s26, 16  ;;  %s215_s30 = scalar_lea.vmem %s166_s26, 32 }
   0x6   :  { %59 = vmax.xlane.f32.xlu0 %v45_v8  ;;  %51 = vperm.xlu1 %197, %v28_v6   ;;  %p212_p0 = scmp.ne.s32.totalorder %s166_s26, %s211_s29  ;;  %p216_p1 = scmp.lt.s32.totalorder %s166_s26, %s166_s26 }
   0x7   :  { %p217_p2 = scmp.lt.s32.totalorder %s215_s30, %s211_s29 }
   0x8   :  { %v101_v20 = vld [vmem:[#allocation3] sm:$0x1]  ;;  %v87_v4 = vld [vmem:[#allocation2] sm:$0x1] }
   0x9   :  { %p218_p3 = por %p217_p2, %p216_p1 }
   0xa   :  { %61 = vmax.xlane.f32.xlu0 %v46_v9 }
   0xb   :  { %p219_p4 = pnand %p218_p3, %p212_p0 }
  0x7d   :  { %v49_v10 = vpop.permute.xlu1 %48 }
  0x7e   :  { %vm53_vm1 = vcmp.eq.s32.totalorder %v316_v5, %v49_v10 }
  0x7f   :  { %v190_v11 = vsel %vm53_vm1, 1.0, %v276_v3 }
  0x80   :  { %v79_v37 = vmul.f32 %v190_v11, %v45_v8 }
  0x81   :  { %v52_v12 = vpop.permute.xlu1 %51 }
  0x82   :  { %vm54_vm2 = vcmp.eq.s32.totalorder %v316_v5, %v52_v12 }
  0x83   :  { %v191_v13 = vsel %vm54_vm2, 1.0, %v276_v3 }
  0x84   :  { %v104_v14 = vadd.f32 %v191_v13, %v190_v11  ;;  %v80_v38 = vmul.f32 %v191_v13, %v46_v9 }
  0x86   :  { %v105_v15 = vrot.slane %v104_v14, 4 }
  0x88   :  { %v106_v16 = vadd.f32 %v105_v15, %v104_v14 }
  0x8a   :  { %v107_v17 = vrot.slane %v106_v16, 2 }
  0x8c   :  { %v108_v18 = vadd.f32 %v107_v17, %v106_v16 }
  0x8e   :  { %v109_v19 = vrot.slane %v108_v18, 1 }
  0x8f   :  { %v60_v21 = vpop.xlane.xlu0 %59 }
  0x90   :  { %v110_v22 = vadd.f32 %v109_v19, %v108_v18  ;;  %v63_v23 = vsub.f32 %v45_v8, %v60_v21 }
  0x92   :  { %v111_v24 = vadd.f32 %v110_v22, %v101_v20  ;;  %v65_v25 = vmul.f32 1.442695, %v63_v23 }
  0x93   :  { %v62_v26 = vpop.xlane.xlu0 %61 }
  0x94   :  { %112 = vst [vmem:[#allocation3] sm:$0x1] %v111_v24  ;;  %199 = vpow2.f32 %v65_v25  ;;  %v64_v27 = vsub.f32 %v46_v9, %v62_v26 }
  0x96   :  { %v67_v28 = vmul.f32 1.442695, %v64_v27 }
  0x98   :  { %201 = vpow2.f32 %v67_v28 }
  0x9b   :  { %v118_v30 = vld [vmem:[#allocation3] sm:$0x1] }
  0x9c   :  { %v119_v31 = vsel %vm117_vm3, %v118_v30, 0.0 }
  0x9d   :  { %v120_v32 = vadd.f32 %v119_v31, %v116_v29 }
  0x9f   :  { %144 = vst [vmem:[#allocation4] sm:$0x1] %v120_v32  ;;  %v121_v33 = vsel %vm117_vm3, %v120_v32, 0.0 }
  0xa0   :  { %v123_v35 = vsel %vm122_vm4, %v121_v33, 0.0 }
  0xa1   :  { %v200_v34 = vpop.eup %199 }
  0xa2   :  { %69 = vadd.xlane.f32.xlu0 %v200_v34 }
  0xa5   :  { %v202_v36 = vpop.eup %201 }
  0xa6   :  { %71 = vadd.xlane.f32.xlu1 %v202_v36  ;;  %124 = vadd.xlane.f32.xlu0 %v123_v35 }
  0xaa   :  { %81 = vadd.xlane.f32.xlu0 %v79_v37 }
  0xae   :  { %83 = vadd.xlane.f32.xlu0 %v80_v38 }
 0x12b   :  { %v70_v39 = vpop.xlane.xlu0 %69 }
 0x12c   :  { %203 = vlog2.f32 %v70_v39 }
 0x12f   :  { %v72_v40 = vpop.xlane.xlu1 %71  ;;  %v125_v41 = vpop.xlane.xlu0 %124 }
 0x130   :  { %205 = vlog2.f32 %v72_v40 }
 0x131   :  { %207 = vrcp.f32 %v125_v41 }
 0x133   :  { %v82_v44 = vpop.xlane.xlu0 %81 }
 0x137   :  { %v84_v52 = vpop.xlane.xlu0 %83 }
 0x139   :  { %v204_v42 = vpop.eup %203 }
 0x13a   :  { %v74_v43 = vmul.f32 0.6931472, %v204_v42 }
 0x13c   :  { %v77_v45 = vadd.f32 %v74_v43, %v60_v21 }
 0x13d   :  { %v206_v46 = vpop.eup %205 }
 0x13e   :  { %v208_v47 = vpop.eup %207  ;;  %v76_v48 = vmul.f32 0.6931472, %v206_v46  ;;  %v85_v50 = vsub.f32 %v77_v45, %v82_v44 }
 0x13f   :  { %v127_v49 = vmul.f32 %v208_v47, %v120_v32 }
 0x140   :  { %v78_v51 = vadd.f32 %v76_v48, %v62_v26  ;;  %v90_v56 = vmul.f32 %v190_v11, %v85_v50 }
 0x141   :  { %v128_v53 = vsub.f32 1.0, %v127_v49 }
 0x142   :  { %v86_v54 = vsub.f32 %v78_v51, %v84_v52 }
 0x143   :  { %v129_v55 = vmul.f32 %v128_v53, %v128_v53 }
 0x144   :  { %v91_v57 = vmul.f32 %v191_v13, %v86_v54 }
 0x145   :  { %v130_v58 = vmul.f32 3.0, %v129_v55 }
 0x146   :  { %v92_v59 = vadd.f32 %v91_v57, %v90_v56 }
 0x147   :  { %v132_v60 = vsel %vm131_vm5, 1.0, %v130_v58 }
 0x148   :  { %v93_v61 = vrot.slane %v92_v59, 4  ;;  %v138_v62 = vmul.f32 %v132_v60, %v118_v30  ;;  %145 = vst [vmem:[#allocation6] sm:$0x1] %v132_v60 }
 0x14a   :  { %v94_v63 = vadd.f32 %v93_v61, %v92_v59  ;;  %v139_v0 = vsel %vm122_vm4, %v138_v62, 0.0 }
 0x14b   :  { %140 = vadd.xlane.f32.xlu0 %v139_v0 }
 0x14c   :  { %v95_v1 = vrot.slane %v94_v63, 2 }
 0x14e   :  { %v96_v2 = vadd.f32 %v95_v1, %v94_v63 }
 0x150   :  { %v97_v3 = vrot.slane %v96_v2, 1 }
 0x152   :  { %v98_v6 = vadd.f32 %v97_v3, %v96_v2 }
 0x154   :  { %v99_v7 = vadd.f32 %v98_v6, %v87_v4 }
 0x156   :  { %100 = vst [vmem:[#allocation2] sm:$0x1] %v99_v7 }
 0x15d   :  { %v133_v8 = vld [vmem:[#allocation2] sm:$0x1] }
 0x15e   :  { %v134_v9 = vmul.f32 %v133_v8, %v132_v60 }
 0x160   :  { %v135_v10 = vsel %vm122_vm4, %v134_v9, 0.0 }
 0x161   :  { %136 = vadd.xlane.f32.xlu0 %v135_v10 }
 0x162   :  { %222 = shalt.err (!%p219_p4)
}
 0x163   :  { %168 = dma.vmem_to_hbm [thread:$0]  %s166_s26, 16, %s349_s4, [#allocation7]  }
 0x164   :  { %s231_s8 = scalar_lea.vmem %s156_s28, 16  ;;  %s235_s9 = scalar_lea.vmem %s156_s28, 32 }
 0x165   :  { %p232_p5 = scmp.ne.s32.totalorder %s156_s28, %s231_s8  ;;  %p236_p6 = scmp.lt.s32.totalorder %s156_s28, %s156_s28 }
 0x166   :  { %p237_p7 = scmp.lt.s32.totalorder %s235_s9, %s231_s8 }
 0x168   :  { %p238_p8 = por %p237_p7, %p236_p6 }
 0x16a   :  { %p239_p9 = pnand %p238_p8, %p232_p5 }
 0x16c   :  { %242 = shalt.err (!%p239_p9)
}
 0x16d   :  { %158 = dma.vmem_to_hbm [thread:$0]  %s156_s28, 16, %s348_s3, [#allocation5]   ;;  %vm146_vm6 = vcmp.eq.s32.totalorder %v316_v5, 0 }
 0x16e   :  { %s279_s12 = smov [#allocation8]  }
 0x16f   :  { %s175_s13 = sshll.u32 %s279_s12, 4  ;;  %s176_s13 = int_to_ptr.vmem [resolvable:$true] %s175_s13 }
 0x170   :  { %s251_s4 = scalar_lea.vmem %s176_s13, 16  ;;  %s255_s14 = scalar_lea.vmem %s176_s13, 32 }
 0x171   :  { %p252_p10 = scmp.ne.s32.totalorder %s176_s13, %s251_s4  ;;  %p256_p11 = scmp.lt.s32.totalorder %s176_s13, %s176_s13 }
 0x172   :  { %p257_p12 = scmp.lt.s32.totalorder %s255_s14, %s251_s4 }
 0x174   :  { %p258_p13 = por %p257_p12, %p256_p11 }
 0x176   :  { %p259_p0 = pnand %p258_p13, %p252_p10 }
 0x1d4   :  { %v141_v11 = vpop.xlane.xlu0 %140 }
 0x1d5   :  { %209 = vrcp.f32 %v141_v11 }
 0x1e2   :  { %v210_v12 = vpop.eup %209 }
 0x1ea   :  { %v137_v13 = vpop.xlane.xlu0 %136 }
 0x1eb   :  { %v143_v14 = vmul.f32 %v210_v12, %v137_v13 }
 0x1ed   :  { %v147_v15 = vsel %vm146_vm6, %v143_v14, 0.0 }
 0x1ee   :  { %148 = vst [vmem:[#allocation8] sm:$0x1] %v147_v15 }
 0x1ef   :  { %262 = shalt.err (!%p259_p0)
}
 0x1f0   :  { %178 = dma.vmem_to_hbm [thread:$0]  %s176_s13, 16, %s350_s5, [#allocation7]  }
 0x1f1   :  { %271 = dma.done.wait [#allocation5], 16  }
 0x1f2   :  { %272 = vsyncadd [#allocation5], 4294967280 }
 0x1f3   :  { %273 = dma.done.wait [#allocation7], 32  }
 0x1f4   :  { %274 = vsyncadd [#allocation7], 4294967264 }
 0x1f5   :  { %188 = vsyncpa [#allocation5], 1 }
 0x1f6   :  { %189 = vsyncpa [#allocation7], 1 }

</bundles_post_ra>
